<compile_context>
chip_gen: v7x
topology: tpu7x:2x2x1
jax: 0.10.0
libtpu: 0.0.40
codegen_flags: <defaults>
</compile_context>

<pallas_src>
import functools

import jax
import jax.numpy as jnp
from jax.experimental import pallas as pl
from jax.experimental.pallas import tpu as pltpu

# Layer sizes straight from the PyTorch module.
INPUT_SIZE = 27
FC1, FC2, FC3, FC4, FC5 = 130, 250, 140, 60, 9

# Padded (lane-aligned) feature sizes.
D0, D1, D2, D3, D4, D5 = 128, 256, 256, 256, 128, 128
_PADDED_DIMS = (D0, D1, D2, D3, D4, D5)
_ORIG_DIMS = (INPUT_SIZE, FC1, FC2, FC3, FC4, FC5)


def _round_up(n: int, m: int) -> int:
    return ((n + m - 1) // m) * m


def _cdiv(a: int, b: int) -> int:
    return -(-a // b)


def _choose_batch_tiling(batch: int, tb: int):
    """Pick (TB, n_tiles, B_pad).

    TB is always a multiple of 16 (bf16 sublane pack).  Prefers >= 2 even
    tiles for mid/large batches so v7x's two TensorCores both get work,
    while sizing TB ~ cdiv(B, n_tiles) to keep B_pad - B waste small.
    """
    tb = max(16, _round_up(tb, 16))
    b16 = _round_up(batch, 16)
    if b16 <= tb:
        if b16 >= 256:
            n_tiles = 2
            tile = _round_up(_cdiv(b16, 2), 16)
        else:
            n_tiles = 1
            tile = b16
    else:
        n_tiles = _cdiv(b16, tb)
        if n_tiles % 2:
            n_tiles += 1                       # even tile count for 2 TCs
        tile = _round_up(_cdiv(b16, n_tiles), 16)
    if tile >= 256:
        tile = _round_up(tile, 32)             # lets the kernel split in two
    return tile, n_tiles, tile * n_tiles


def mlp_kernel(x_ref,
               w1_ref, b1_ref,
               w2_ref, b2_ref,
               w3_ref, b3_ref,
               w4_ref, b4_ref,
               w5_ref, b5_ref,
               o_ref, *, num_splits):
    """Fused 5-layer MLP on one (TB, D0) bf16 batch tile.

    Weights are bf16; activations are cast to bf16 at each MXU input and
    accumulated in f32.  ReLU after layers 1-4, none after layer 5.  The
    tile is processed as `num_splits` independent row blocks so consecutive
    layers of different blocks can overlap (hides MXU fill/drain latency).
    """
    layers = (
        (w1_ref, b1_ref, True),
        (w2_ref, b2_ref, True),
        (w3_ref, b3_ref, True),
        (w4_ref, b4_ref, True),
        (w5_ref, b5_ref, False),
    )

    rows = x_ref.shape[0] // num_splits

    def layer(h, w_ref, b_ref, relu):
        y = jnp.dot(h.astype(jnp.bfloat16), w_ref[...],
                    preferred_element_type=jnp.float32)
        y = y + b_ref[...]
        if relu:
            y = jnp.maximum(y, 0.0)
        return y

    # Independent dependency chains (static slices of the tile).
    hs = [x_ref[s * rows:(s + 1) * rows, :] for s in range(num_splits)]
    for (w_ref, b_ref, relu) in layers:
        hs = [layer(h, w_ref, b_ref, relu) for h in hs]
    for s in range(num_splits):
        o_ref[s * rows:(s + 1) * rows, :] = hs[s].astype(o_ref.dtype)


@functools.partial(jax.jit, static_argnames=("tb",))
def mytictactoe_forward(x, padded_params, tb=1024):
    """x: (B, 27) float32.  padded_params: padded w1..w5 (bf16), b1..b5 (f32).

    Returns (B, 9) float32 logits (identical to the PyTorch module up to
    bf16 matmul-input / output-store rounding; accumulation is f32).
    """
    B = x.shape[0]
    TB, n_tiles, B_pad = _choose_batch_tiling(B, tb)
    num_splits = 2 if (TB >= 256 and TB % 32 == 0) else 1

    # Pad/cast ONCE to a lane-dense bf16 slab; padded lanes/rows are exactly
    # zero so they stay zero through the ReLUs (weight/bias padding is zero).
    x_pad = jnp.zeros((B_pad, D0), jnp.bfloat16)
    x_pad = x_pad.at[:B, :INPUT_SIZE].set(x.astype(jnp.bfloat16))

    args = (
        x_pad,
        padded_params["w1"], padded_params["b1"],
        padded_params["w2"], padded_params["b2"],
        padded_params["w3"], padded_params["b3"],
        padded_params["w4"], padded_params["b4"],
        padded_params["w5"], padded_params["b5"],
    )

    # x / out tiled along batch; weights & biases use a constant index_map so
    # they stay VMEM-resident across all batch tiles.
    weight_dims = list(zip(_PADDED_DIMS[:-1], _PADDED_DIMS[1:]))
    in_specs = [pl.BlockSpec((TB, D0), lambda i: (i, 0))]
    for (k_dim, n_dim) in weight_dims:
        in_specs.append(pl.BlockSpec((k_dim, n_dim), lambda i: (0, 0)))
        in_specs.append(pl.BlockSpec((1, n_dim), lambda i: (0, 0)))
    out_specs = pl.BlockSpec((TB, D5), lambda i: (i, 0))

    # Advisory cost estimate (helps XLA overlap this call in larger graphs).
    flops = 2 * B_pad * sum(k * n for k, n in weight_dims)
    bytes_accessed = (
        x_pad.size * 2                                       # bf16 input
        + sum(k * n * 2 + n * 4 for k, n in weight_dims)     # bf16 W + f32 b
        + B_pad * D5 * 2                                     # bf16 output
    )
    cost = pl.CostEstimate(flops=flops, transcendentals=0,
                           bytes_accessed=bytes_accessed)

    out_pad = pl.pallas_call(
        functools.partial(mlp_kernel, num_splits=num_splits),
        out_shape=jax.ShapeDtypeStruct((B_pad, D5), jnp.bfloat16),
        grid_spec=pl.GridSpec(
            grid=(n_tiles,),
            in_specs=in_specs,
            out_specs=out_specs,
        ),
        compiler_params=pltpu.CompilerParams(
            dimension_semantics=("parallel",),
        ),
        cost_estimate=cost,
    )(*args)

    return out_pad[:B, :FC5].astype(jnp.float32)


def init_params(key):
    """Deterministic init mimicking PyTorch Linear default U(-1/sqrt(fan_in), +).

    Returns (raw f32 params at original sizes, padded params for the kernel).
    Padded weights are bf16 with zero-filled padding rows/cols; padded biases
    are f32 with zero-filled padding entries.
    """
    sizes = list(zip(_ORIG_DIMS[:-1], _ORIG_DIMS[1:]))
    padded_sizes = list(zip(_PADDED_DIMS[:-1], _PADDED_DIMS[1:]))

    raw, padded = {}, {}
    keys = jax.random.split(key, 2 * len(sizes))
    for i, ((fan_in, fan_out), (kp, np_)) in enumerate(zip(sizes, padded_sizes)):
        bound = 1.0 / (fan_in ** 0.5)
        w = jax.random.uniform(keys[2 * i], (fan_in, fan_out),
                               minval=-bound, maxval=bound, dtype=jnp.float32)
        b = jax.random.uniform(keys[2 * i + 1], (1, fan_out),
                               minval=-bound, maxval=bound, dtype=jnp.float32)
        raw[f"w{i + 1}"] = w
        raw[f"b{i + 1}"] = b

        w_pad = jnp.zeros((kp, np_), jnp.float32).at[:fan_in, :fan_out].set(w)
        b_pad = jnp.zeros((1, np_), jnp.float32).at[:, :fan_out].set(b)
        padded[f"w{i + 1}"] = w_pad.astype(jnp.bfloat16)
        padded[f"b{i + 1}"] = b_pad  # bias stays f32 (added post-accumulate)
    return raw, padded


def ref_forward_bf16(x, padded_params):
    """Plain-JAX reference using the same bf16-weight / f32-accumulate recipe
    (final logits rounded through bf16, matching the kernel's output store)."""
    B = x.shape[0]
    h = jnp.zeros((B, D0), jnp.float32).at[:, :INPUT_SIZE].set(x)
    for i in range(1, 6):
        w = padded_params[f"w{i}"]
        b = padded_params[f"b{i}"]
        h = jnp.dot(h.astype(jnp.bfloat16), w,
                    preferred_element_type=jnp.float32) + b
        if i < 5:
            h = jnp.maximum(h, 0.0)
    return h[:, :FC5].astype(jnp.bfloat16).astype(jnp.float32)


if __name__ == "__main__":
    key = jax.random.PRNGKey(0)
    k_params, k_x = jax.random.split(key)

    raw_params, padded_params = init_params(k_params)

    batch = 8
    x = jax.random.normal(k_x, (batch, INPUT_SIZE), dtype=jnp.float32)

    out = mytictactoe_forward(x, padded_params)
    out = jax.block_until_ready(out)
    assert out.shape == (batch, FC5)

    # Correctness: compare against a plain-JAX reference of the identical
    # bf16-weight / f32-accumulate / bf16-output computation.
    expected = ref_forward_bf16(x, padded_params)
    assert jnp.allclose(out, expected, atol=1e-3, rtol=1e-3), (
        float(jnp.max(jnp.abs(out - expected))))

    print("KERNEL_OK")
</pallas_src>

<mosaic_0001>
module attributes {stable_mosaic.version = 11 : i64} {
  func.func @mlp_kernel(%arg0: i32, %arg1: memref<16x128xbf16, #tpu.memory_space<vmem>>, %arg2: memref<128x256xbf16, #tpu.memory_space<vmem>>, %arg3: memref<1x256xf32, #tpu.memory_space<vmem>>, %arg4: memref<256x256xbf16, #tpu.memory_space<vmem>>, %arg5: memref<1x256xf32, #tpu.memory_space<vmem>>, %arg6: memref<256x256xbf16, #tpu.memory_space<vmem>>, %arg7: memref<1x256xf32, #tpu.memory_space<vmem>>, %arg8: memref<256x128xbf16, #tpu.memory_space<vmem>>, %arg9: memref<1x128xf32, #tpu.memory_space<vmem>>, %arg10: memref<128x128xbf16, #tpu.memory_space<vmem>>, %arg11: memref<1x128xf32, #tpu.memory_space<vmem>>, %arg12: memref<16x128xbf16, #tpu.memory_space<vmem>>) attributes {dimension_semantics = [#tpu.dimension_semantics<parallel>], iteration_bounds = array<i64: 1>, scalar_prefetch = 0 : i64, scratch_operands = 0 : i64, tpu.core_type = #tpu.core_type<tc>, window_params = [{transform_indices = @transform_0, window_bounds = array<i64: 16, 128>}, {pipeline_mode = #tpu.pipeline_mode<synchronous>, transform_indices = @transform_1, window_bounds = array<i64: 128, 256>}, {pipeline_mode = #tpu.pipeline_mode<synchronous>, transform_indices = @transform_2, window_bounds = array<i64: 1, 256>}, {pipeline_mode = #tpu.pipeline_mode<synchronous>, transform_indices = @transform_3, window_bounds = array<i64: 256, 256>}, {pipeline_mode = #tpu.pipeline_mode<synchronous>, transform_indices = @transform_4, window_bounds = array<i64: 1, 256>}, {pipeline_mode = #tpu.pipeline_mode<synchronous>, transform_indices = @transform_5, window_bounds = array<i64: 256, 256>}, {pipeline_mode = #tpu.pipeline_mode<synchronous>, transform_indices = @transform_6, window_bounds = array<i64: 1, 256>}, {pipeline_mode = #tpu.pipeline_mode<synchronous>, transform_indices = @transform_7, window_bounds = array<i64: 256, 128>}, {pipeline_mode = #tpu.pipeline_mode<synchronous>, transform_indices = @transform_8, window_bounds = array<i64: 1, 128>}, {pipeline_mode = #tpu.pipeline_mode<synchronous>, transform_indices = @transform_9, window_bounds = array<i64: 128, 128>}, {pipeline_mode = #tpu.pipeline_mode<synchronous>, transform_indices = @transform_10, window_bounds = array<i64: 1, 128>}, {transform_indices = @transform_11, window_bounds = array<i64: 16, 128>}]} {
    %c0 = arith.constant 0 : index
    %c0_0 = arith.constant 0 : index
    %0 = vector.load %arg1[%c0, %c0_0] : memref<16x128xbf16, #tpu.memory_space<vmem>>, vector<16x128xbf16>
    %c0_1 = arith.constant 0 : index
    %c0_2 = arith.constant 0 : index
    %1 = vector.load %arg2[%c0_1, %c0_2] : memref<128x256xbf16, #tpu.memory_space<vmem>>, vector<128x256xbf16>
    %cst = arith.constant dense<0.000000e+00> : vector<16x256xf32>
    %2 = tpu.matmul %0, %1, %cst {dimension_numbers = #tpu.dot_dimension_numbers<[1], [0], [0], [1], [0, 0, 1, 1], [], []>} : vector<16x128xbf16>, vector<128x256xbf16>, vector<16x256xf32> -> vector<16x256xf32>
    %c0_3 = arith.constant 0 : index
    %c0_4 = arith.constant 0 : index
    %3 = vector.load %arg3[%c0_3, %c0_4] : memref<1x256xf32, #tpu.memory_space<vmem>>, vector<1x256xf32>
    %4 = vector.broadcast %3 : vector<1x256xf32> to vector<16x256xf32>
    %5 = arith.addf %2, %4 : vector<16x256xf32>
    %cst_5 = arith.constant 0.000000e+00 : f32
    %6 = vector.broadcast %cst_5 : f32 to vector<16x256xf32>
    %7 = arith.maximumf %5, %6 : vector<16x256xf32>
    %8 = arith.truncf %7 : vector<16x256xf32> to vector<16x256xbf16>
    %c0_6 = arith.constant 0 : index
    %c0_7 = arith.constant 0 : index
    %9 = vector.load %arg4[%c0_6, %c0_7] : memref<256x256xbf16, #tpu.memory_space<vmem>>, vector<256x256xbf16>
    %cst_8 = arith.constant dense<0.000000e+00> : vector<16x256xf32>
    %10 = tpu.matmul %8, %9, %cst_8 {dimension_numbers = #tpu.dot_dimension_numbers<[1], [0], [0], [1], [0, 0, 1, 1], [], []>} : vector<16x256xbf16>, vector<256x256xbf16>, vector<16x256xf32> -> vector<16x256xf32>
    %c0_9 = arith.constant 0 : index
    %c0_10 = arith.constant 0 : index
    %11 = vector.load %arg5[%c0_9, %c0_10] : memref<1x256xf32, #tpu.memory_space<vmem>>, vector<1x256xf32>
    %12 = vector.broadcast %11 : vector<1x256xf32> to vector<16x256xf32>
    %13 = arith.addf %10, %12 : vector<16x256xf32>
    %cst_11 = arith.constant 0.000000e+00 : f32
    %14 = vector.broadcast %cst_11 : f32 to vector<16x256xf32>
    %15 = arith.maximumf %13, %14 : vector<16x256xf32>
    %16 = arith.truncf %15 : vector<16x256xf32> to vector<16x256xbf16>
    %c0_12 = arith.constant 0 : index
    %c0_13 = arith.constant 0 : index
    %17 = vector.load %arg6[%c0_12, %c0_13] : memref<256x256xbf16, #tpu.memory_space<vmem>>, vector<256x256xbf16>
    %cst_14 = arith.constant dense<0.000000e+00> : vector<16x256xf32>
    %18 = tpu.matmul %16, %17, %cst_14 {dimension_numbers = #tpu.dot_dimension_numbers<[1], [0], [0], [1], [0, 0, 1, 1], [], []>} : vector<16x256xbf16>, vector<256x256xbf16>, vector<16x256xf32> -> vector<16x256xf32>
    %c0_15 = arith.constant 0 : index
    %c0_16 = arith.constant 0 : index
    %19 = vector.load %arg7[%c0_15, %c0_16] : memref<1x256xf32, #tpu.memory_space<vmem>>, vector<1x256xf32>
    %20 = vector.broadcast %19 : vector<1x256xf32> to vector<16x256xf32>
    %21 = arith.addf %18, %20 : vector<16x256xf32>
    %cst_17 = arith.constant 0.000000e+00 : f32
    %22 = vector.broadcast %cst_17 : f32 to vector<16x256xf32>
    %23 = arith.maximumf %21, %22 : vector<16x256xf32>
    %24 = arith.truncf %23 : vector<16x256xf32> to vector<16x256xbf16>
    %c0_18 = arith.constant 0 : index
    %c0_19 = arith.constant 0 : index
    %25 = vector.load %arg8[%c0_18, %c0_19] : memref<256x128xbf16, #tpu.memory_space<vmem>>, vector<256x128xbf16>
    %cst_20 = arith.constant dense<0.000000e+00> : vector<16x128xf32>
    %26 = tpu.matmul %24, %25, %cst_20 {dimension_numbers = #tpu.dot_dimension_numbers<[1], [0], [0], [1], [0, 0, 1, 1], [], []>} : vector<16x256xbf16>, vector<256x128xbf16>, vector<16x128xf32> -> vector<16x128xf32>
    %c0_21 = arith.constant 0 : index
    %c0_22 = arith.constant 0 : index
    %27 = vector.load %arg9[%c0_21, %c0_22] : memref<1x128xf32, #tpu.memory_space<vmem>>, vector<1x128xf32>
    %28 = vector.broadcast %27 : vector<1x128xf32> to vector<16x128xf32>
    %29 = arith.addf %26, %28 : vector<16x128xf32>
    %cst_23 = arith.constant 0.000000e+00 : f32
    %30 = vector.broadcast %cst_23 : f32 to vector<16x128xf32>
    %31 = arith.maximumf %29, %30 : vector<16x128xf32>
    %32 = arith.truncf %31 : vector<16x128xf32> to vector<16x128xbf16>
    %c0_24 = arith.constant 0 : index
    %c0_25 = arith.constant 0 : index
    %33 = vector.load %arg10[%c0_24, %c0_25] : memref<128x128xbf16, #tpu.memory_space<vmem>>, vector<128x128xbf16>
    %cst_26 = arith.constant dense<0.000000e+00> : vector<16x128xf32>
    %34 = tpu.matmul %32, %33, %cst_26 {dimension_numbers = #tpu.dot_dimension_numbers<[1], [0], [0], [1], [0, 0, 1, 1], [], []>} : vector<16x128xbf16>, vector<128x128xbf16>, vector<16x128xf32> -> vector<16x128xf32>
    %c0_27 = arith.constant 0 : index
    %c0_28 = arith.constant 0 : index
    %35 = vector.load %arg11[%c0_27, %c0_28] : memref<1x128xf32, #tpu.memory_space<vmem>>, vector<1x128xf32>
    %36 = vector.broadcast %35 : vector<1x128xf32> to vector<16x128xf32>
    %37 = arith.addf %34, %36 : vector<16x128xf32>
    %38 = arith.truncf %37 : vector<16x128xf32> to vector<16x128xbf16>
    %c0_29 = arith.constant 0 : index
    %c0_30 = arith.constant 0 : index
    %39 = vector.load %arg12[%c0_29, %c0_30] : memref<16x128xbf16, #tpu.memory_space<vmem>>, vector<16x128xbf16>
    tpu.vector_store %arg12[%c0_29, %c0_30], %38 {strides = array<i32>} : memref<16x128xbf16, #tpu.memory_space<vmem>>, vector<16x128xbf16>,
    return
  }
  func.func @transform_0(%arg0: i32) -> (i32, i32) {
    %c0_i32 = arith.constant 0 : i32
    %c0_i32_0 = arith.constant 0 : i32
    return %arg0, %c0_i32 : i32, i32
  }
  func.func @transform_1(%arg0: i32) -> (i32, i32) {
    %c0_i32 = arith.constant 0 : i32
    %c0_i32_0 = arith.constant 0 : i32
    %c0_i32_1 = arith.constant 0 : i32
    return %c0_i32, %c0_i32_0 : i32, i32
  }
  func.func @transform_2(%arg0: i32) -> (i32, i32) {
    %c0_i32 = arith.constant 0 : i32
    %c0_i32_0 = arith.constant 0 : i32
    %c0_i32_1 = arith.constant 0 : i32
    return %c0_i32, %c0_i32_0 : i32, i32
  }
  func.func @transform_3(%arg0: i32) -> (i32, i32) {
    %c0_i32 = arith.constant 0 : i32
    %c0_i32_0 = arith.constant 0 : i32
    %c0_i32_1 = arith.constant 0 : i32
    return %c0_i32, %c0_i32_0 : i32, i32
  }
  func.func @transform_4(%arg0: i32) -> (i32, i32) {
    %c0_i32 = arith.constant 0 : i32
    %c0_i32_0 = arith.constant 0 : i32
    %c0_i32_1 = arith.constant 0 : i32
    return %c0_i32, %c0_i32_0 : i32, i32
  }
  func.func @transform_5(%arg0: i32) -> (i32, i32) {
    %c0_i32 = arith.constant 0 : i32
    %c0_i32_0 = arith.constant 0 : i32
    %c0_i32_1 = arith.constant 0 : i32
    return %c0_i32, %c0_i32_0 : i32, i32
  }
  func.func @transform_6(%arg0: i32) -> (i32, i32) {
    %c0_i32 = arith.constant 0 : i32
    %c0_i32_0 = arith.constant 0 : i32
    %c0_i32_1 = arith.constant 0 : i32
    return %c0_i32, %c0_i32_0 : i32, i32
  }
  func.func @transform_7(%arg0: i32) -> (i32, i32) {
    %c0_i32 = arith.constant 0 : i32
    %c0_i32_0 = arith.constant 0 : i32
    %c0_i32_1 = arith.constant 0 : i32
    return %c0_i32, %c0_i32_0 : i32, i32
  }
  func.func @transform_8(%arg0: i32) -> (i32, i32) {
    %c0_i32 = arith.constant 0 : i32
    %c0_i32_0 = arith.constant 0 : i32
    %c0_i32_1 = arith.constant 0 : i32
    return %c0_i32, %c0_i32_0 : i32, i32
  }
  func.func @transform_9(%arg0: i32) -> (i32, i32) {
    %c0_i32 = arith.constant 0 : i32
    %c0_i32_0 = arith.constant 0 : i32
    %c0_i32_1 = arith.constant 0 : i32
    return %c0_i32, %c0_i32_0 : i32, i32
  }
  func.func @transform_10(%arg0: i32) -> (i32, i32) {
    %c0_i32 = arith.constant 0 : i32
    %c0_i32_0 = arith.constant 0 : i32
    %c0_i32_1 = arith.constant 0 : i32
    return %c0_i32, %c0_i32_0 : i32, i32
  }
  func.func @transform_11(%arg0: i32) -> (i32, i32) {
    %c0_i32 = arith.constant 0 : i32
    %c0_i32_0 = arith.constant 0 : i32
    return %arg0, %c0_i32 : i32, i32
  }
}

</mosaic_0001>

<bundles_post_ra>
// kernel: mytictactoe_forward.1
= control target key start
LH: loop header
LB: loop body
LE: loop exit
PB: predicated region body
PF: predicated region fallthrough
CT: control target
= control target key end

     0   :  { %16 = vsyncpa [#allocation3], 0  ;;  %s1718_s0 = inlined_call_operand.vmem [shape: bf16[16,128], index: 0, kind: input, shape index: {}]   ;;  %s1719_s1 = inlined_call_operand.hbm [shape: bf16[128,256], index: 1, kind: input, shape index: {}]   ;;  %s1720_s2 = inlined_call_operand.vmem [shape: f32[1,256], index: 2, kind: input, shape index: {}]   ;;  %s1721_s3 = inlined_call_operand.hbm [shape: bf16[256,256], index: 3, kind: input, shape index: {}]   ;;  %s1722_s4 = inlined_call_operand.vmem [shape: f32[1,256], index: 4, kind: input, shape index: {}]   ;;  %s1723_s5 = inlined_call_operand.hbm [shape: bf16[256,256], index: 5, kind: input, shape index: {}]   ;;  %s1724_s6 = inlined_call_operand.vmem [shape: f32[1,256], index: 6, kind: input, shape index: {}]   ;;  %s1725_s7 = inlined_call_operand.hbm [shape: bf16[256,128], index: 7, kind: input, shape index: {}]   ;;  %s1726_s8 = inlined_call_operand.vmem [shape: f32[1,128], index: 8, kind: input, shape index: {}]   ;;  %s1727_s9 = inlined_call_operand.hbm [shape: bf16[128,128], index: 9, kind: input, shape index: {}]   ;;  %s1728_s10 = inlined_call_operand.vmem [shape: f32[1,128], index: 10, kind: input, shape index: {}]   ;;  %s1729_s11 = inlined_call_operand.vmem [shape: bf16[16,128], index: 11, kind: output, shape index: {}]  }
   0x1   :  { %17 = vsyncpa [#allocation5], 0 }
   0x2   :  { %18 = vsyncpa [#allocation8], 0  ;;  %s1526_s17 = smov [#allocation4]   ;;  %s1527_s19 = smov [#allocation7]  }
   0x3   :  { %s40_s18 = sshll.u32 %s1526_s17, 4  ;;  %s68_s20 = sshll.u32 %s1527_s19, 4  ;;  %s41_s18 = int_to_ptr.vmem [resolvable:$true] %s40_s18  ;;  %s1598_s20 = int_to_ptr.vmem [resolvable:$true] %s68_s20 }
   0x4   :  { %s1410_s23 = scalar_lea.hbm %s1721_s3, 4096 }
   0x5   :  { %p1411_p0 = scmp.ne.s32.totalorder %s1721_s3, %s1410_s23  ;;  %p1414_p1 = scmp.lt.u32.totalorder %s1410_s23, %s1721_s3 }
   0x7   :  { %p1416_p2 = pnand %p1414_p1, %p1411_p0 }
   0x9   :  { %1419 = shalt.err (!%p1416_p2)
}
   0xa   :  { %s1420_s28 = scalar_lea.vmem %s41_s18, 4096  ;;  %p1425_p4 = scmp.lt.s32.totalorder %s41_s18, %s41_s18 }
   0xb   :  { %p1421_p3 = scmp.ne.s32.totalorder %s41_s18, %s1420_s28  ;;  %p1426_p5 = scmp.lt.s32.totalorder %s1420_s28, %s1420_s28 }
   0xd   :  { %p1427_p6 = por %p1426_p5, %p1425_p4 }
   0xf   :  { %p1428_p7 = pnand %p1427_p6, %p1421_p3 }
  0x11   :  { %1431 = shalt.err (!%p1428_p7)
}
  0x12   :  { %s1528_s29 = smov 128   ;;  %s1529_s30 = smov 8  }
  0x13   :  { %46 = dma.hbm_to_vmem [thread:$0]  %s1721_s3, 4096, %s41_s18, [#allocation5], %s1528_s29, %s1528_s29, %s1529_s30  }
  0x14   :  { %s1432_s16 = scalar_lea.hbm %s1725_s7, 2048 }
  0x15   :  { %p1433_p8 = scmp.ne.s32.totalorder %s1725_s7, %s1432_s16  ;;  %p1436_p9 = scmp.lt.u32.totalorder %s1432_s16, %s1725_s7 }
  0x17   :  { %p1438_p10 = pnand %p1436_p9, %p1433_p8 }
  0x19   :  { %1441 = shalt.err (!%p1438_p10)
}
  0x1a   :  { %s1442_s23 = scalar_lea.vmem %s1598_s20, 2048  ;;  %p1447_p12 = scmp.lt.s32.totalorder %s1598_s20, %s1598_s20 }
  0x1b   :  { %p1443_p11 = scmp.ne.s32.totalorder %s1598_s20, %s1442_s23  ;;  %p1448_p13 = scmp.lt.s32.totalorder %s1442_s23, %s1442_s23 }
  0x1d   :  { %p1449_p0 = por %p1448_p13, %p1447_p12 }
  0x1f   :  { %p1450_p1 = pnand %p1449_p0, %p1443_p11 }
  0x21   :  { %1453 = shalt.err (!%p1450_p1)
}
  0x22   :  { %s1530_s3 = smov 64   ;;  %s1531_s18 = smov 4  }
  0x23   :  { %74 = dma.hbm_to_vmem [thread:$0]  %s1725_s7, 2048, %s1598_s20, [#allocation8], %s1530_s3, %s1530_s3, %s1531_s18  }
  0x24   :  { %s1532_s26 = smov [#allocation2]   ;;  %s1533_s28 = smov [#allocation6]  }
  0x25   :  { %s26_s27 = sshll.u32 %s1532_s26, 4  ;;  %s54_s12 = sshll.u32 %s1533_s28, 4  ;;  %s27_s27 = int_to_ptr.vmem [resolvable:$true] %s26_s27  ;;  %s1635_s12 = int_to_ptr.vmem [resolvable:$true] %s54_s12 }
  0x26   :  { %s1454_s15 = scalar_lea.hbm %s1719_s1, 2048 }
  0x27   :  { %p1455_p2 = scmp.ne.s32.totalorder %s1719_s1, %s1454_s15  ;;  %p1458_p3 = scmp.lt.u32.totalorder %s1454_s15, %s1719_s1 }
  0x29   :  { %p1460_p4 = pnand %p1458_p3, %p1455_p2 }
  0x2b   :  { %1463 = shalt.err (!%p1460_p4)
}
  0x2c   :  { %s1464_s7 = scalar_lea.vmem %s27_s27, 2048  ;;  %p1469_p6 = scmp.lt.s32.totalorder %s27_s27, %s27_s27 }
  0x2d   :  { %p1465_p5 = scmp.ne.s32.totalorder %s27_s27, %s1464_s7  ;;  %p1470_p7 = scmp.lt.s32.totalorder %s1464_s7, %s1464_s7 }
  0x2f   :  { %p1471_p8 = por %p1470_p7, %p1469_p6 }
  0x31   :  { %p1472_p9 = pnand %p1471_p8, %p1465_p5 }
  0x33   :  { %1475 = shalt.err (!%p1472_p9)
}
  0x34   :  { %32 = dma.hbm_to_vmem [thread:$0]  %s1719_s1, 2048, %s27_s27, [#allocation3], %s1528_s29, %s1528_s29, %s1529_s30  }
  0x35   :  { %s1476_s25 = scalar_lea.hbm %s1723_s5, 4096 }
  0x36   :  { %p1477_p10 = scmp.ne.s32.totalorder %s1723_s5, %s1476_s25  ;;  %p1480_p11 = scmp.lt.u32.totalorder %s1476_s25, %s1723_s5 }
  0x38   :  { %p1482_p12 = pnand %p1480_p11, %p1477_p10 }
  0x3a   :  { %1485 = shalt.err (!%p1482_p12)
}
  0x3b   :  { %s1486_s15 = scalar_lea.vmem %s1635_s12, 4096  ;;  %p1491_p0 = scmp.lt.s32.totalorder %s1635_s12, %s1635_s12 }
  0x3c   :  { %p1487_p13 = scmp.ne.s32.totalorder %s1635_s12, %s1486_s15  ;;  %p1492_p1 = scmp.lt.s32.totalorder %s1486_s15, %s1486_s15 }
  0x3e   :  { %p1493_p2 = por %p1492_p1, %p1491_p0 }
  0x40   :  { %p1494_p3 = pnand %p1493_p2, %p1487_p13 }
  0x42   :  { %1497 = shalt.err (!%p1494_p3)
}
  0x43   :  { %60 = dma.hbm_to_vmem [thread:$0]  %s1723_s5, 4096, %s1635_s12, [#allocation5], %s1528_s29, %s1528_s29, %s1529_s30  }
  0x44   :  { %s1534_s16 = smov [#allocation9]   ;;  %s1498_s7 = scalar_lea.hbm %s1727_s9, 1024 }
  0x45   :  { %s82_s17 = sshll.u32 %s1534_s16, 4  ;;  %p1499_p4 = scmp.ne.s32.totalorder %s1727_s9, %s1498_s7  ;;  %s83_s17 = int_to_ptr.vmem [resolvable:$true] %s82_s17 }
  0x46   :  { %p1502_p5 = scmp.lt.u32.totalorder %s1498_s7, %s1727_s9 }
  0x48   :  { %p1504_p6 = pnand %p1502_p5, %p1499_p4 }
  0x4a   :  { %1507 = shalt.err (!%p1504_p6)
}
  0x4b   :  { %s1508_s25 = scalar_lea.vmem %s83_s17, 1024  ;;  %p1513_p8 = scmp.lt.s32.totalorder %s83_s17, %s83_s17 }
  0x4c   :  { %p1509_p7 = scmp.ne.s32.totalorder %s83_s17, %s1508_s25  ;;  %p1514_p9 = scmp.lt.s32.totalorder %s1508_s25, %s1508_s25 }
  0x4e   :  { %p1515_p10 = por %p1514_p9, %p1513_p8 }
  0x50   :  { %p1516_p11 = pnand %p1515_p10, %p1509_p7 }
  0x52   :  { %1519 = shalt.err (!%p1516_p11)
}
  0x53   :  { %88 = dma.hbm_to_vmem [thread:$0]  %s1727_s9, 1024, %s83_s17, [#allocation8], %s1530_s3, %s1530_s3, %s1531_s18  }
  0x54   :  { %1520 = dma.done.wait [#allocation3], 2048  }
  0x55   :  { %1521 = vsyncadd [#allocation3], 4294965248 }
  0x56   :  { %1522 = dma.done.wait [#allocation5], 8192  }
  0x57   :  { %1523 = vsyncadd [#allocation5], 4294959104 }
  0x58   :  { %1524 = dma.done.wait [#allocation8], 3072  }
  0x59   :  { %1525 = vsyncadd [#allocation8], 4294964224  ;;  %v1535_v0 = vmov 0   ;;  %v1265_v1 = vld [vmem:[#allocation2 + $0x4] ss:$8 sps:$4 sm:$0xff]   ;;  %vm1537_vm0 = vmmov 0  }
  0x5a   :  { %255 = vmatprep.mubr.bf16.mxu0 %v1535_v0  ;;  %v1267_v2 = vld [vmem:[#allocation2] ss:$8 sps:$4 sm:$0xff]   ;;  %223 = vmatprep.subr.bf16.mxu0 %v1265_v1  ;;  %v1268_v3 = vld [vmem:[#allocation2 + $0x14] ss:$8 sps:$4 sm:$0xff]   ;;  %v1270_v4 = vld [vmem:[#allocation2 + $0x10] ss:$8 sps:$4 sm:$0xff]  }
  0x5b   :  { %224 = vmatpush1.bf16.msra.mxu0 %v1267_v2  ;;  %v1271_v5 = vld [vmem:[#allocation2 + $0x24] ss:$8 sps:$4 sm:$0xff]   ;;  %v1273_v6 = vld [vmem:[#allocation2 + $0x20] ss:$8 sps:$4 sm:$0xff]   ;;  %v1274_v7 = vld [vmem:[#allocation2 + $0x34] ss:$8 sps:$4 sm:$0xff]  }
  0x5c   :  { %225 = vmatprep.subr.bf16.mxu0 %v1268_v3  ;;  %v1276_v8 = vld [vmem:[#allocation2 + $0x30] ss:$8 sps:$4 sm:$0xff]   ;;  %v1277_v9 = vld [vmem:[#allocation2 + $0x44] ss:$8 sps:$4 sm:$0xff]   ;;  %v1292_v11 = vld [vmem:[#allocation4] ss:$8 sps:$4 sm:$0xff]  }
  0x5d   :  { %v1290_v10 = vld [vmem:[#allocation4 + $0x4] ss:$8 sps:$4 sm:$0xff]   ;;  %v1293_v12 = vld [vmem:[#allocation4 + $0x14] ss:$8 sps:$4 sm:$0xff]   ;;  %v1279_v13 = vld [vmem:[#allocation2 + $0x40] ss:$8 sps:$4 sm:$0xff]  }
  0x5e   :  { %476 = vmatprep.subr.bf16.mxu1 %v1290_v10  ;;  %v1295_v14 = vld [vmem:[#allocation4 + $0x10] ss:$8 sps:$4 sm:$0xff]   ;;  %v1280_v15 = vld [vmem:[#allocation2 + $0x54] ss:$8 sps:$4 sm:$0xff]   ;;  %v1296_v16 = vld [vmem:[#allocation4 + $0x24] ss:$8 sps:$4 sm:$0xff]  }
  0x5f   :  { %226 = vmatpush1.bf16.msra.mxu0 %v1270_v4  ;;  %477 = vmatpush1.bf16.msra.mxu1 %v1292_v11  ;;  %v1282_v17 = vld [vmem:[#allocation2 + $0x50] ss:$8 sps:$4 sm:$0xff]   ;;  %v1298_v18 = vld [vmem:[#allocation4 + $0x20] ss:$8 sps:$4 sm:$0xff]   ;;  %v1283_v19 = vld [vmem:[#allocation2 + $0x64] ss:$8 sps:$4 sm:$0xff]  }
  0x60   :  { %227 = vmatprep.subr.bf16.mxu0 %v1271_v5  ;;  %478 = vmatprep.subr.bf16.mxu1 %v1293_v12  ;;  %v1299_v20 = vld [vmem:[#allocation4 + $0x34] ss:$8 sps:$4 sm:$0xff]   ;;  %v1285_v21 = vld [vmem:[#allocation2 + $0x60] ss:$8 sps:$4 sm:$0xff]   ;;  %v1301_v22 = vld [vmem:[#allocation4 + $0x30] ss:$8 sps:$4 sm:$0xff]  }
  0x61   :  { %v1286_v23 = vld [vmem:[#allocation2 + $0x74] ss:$8 sps:$4 sm:$0xff]   ;;  %v1302_v24 = vld [vmem:[#allocation4 + $0x44] ss:$8 sps:$4 sm:$0xff]   ;;  %v1288_v25 = vld [vmem:[#allocation2 + $0x70] ss:$8 sps:$4 sm:$0xff]  }
  0x62   :  { %v1304_v26 = vld [vmem:[#allocation4 + $0x40] ss:$8 sps:$4 sm:$0xff]   ;;  %v1305_v28 = vld [vmem:[#allocation4 + $0x54] ss:$8 sps:$4 sm:$0xff]   ;;  %v1307_v29 = vld [vmem:[#allocation4 + $0x50] ss:$8 sps:$4 sm:$0xff]  }
  0x63   :  { %228 = vmatpush1.bf16.msra.mxu0 %v1273_v6  ;;  %479 = vmatpush1.bf16.msra.mxu1 %v1295_v14  ;;  %v1289_v27 = vld [vmem:[%s1718_s0] sm:$0xff]   ;;  %v1311_v32 = vld [vmem:[#allocation4 + $0x74] ss:$8 sps:$4 sm:$0xff]   ;;  %v1313_v33 = vld [vmem:[#allocation4 + $0x70] ss:$8 sps:$4 sm:$0xff]   ;;  %v127_v14 = vlaneseq }
  0x64   :  { %229 = vmatprep.subr.bf16.mxu0 %v1274_v7  ;;  %480 = vmatprep.subr.bf16.mxu1 %v1296_v16  ;;  %v1308_v30 = vld [vmem:[#allocation4 + $0x64] ss:$8 sps:$4 sm:$0xff]   ;;  %v1310_v31 = vld [vmem:[#allocation4 + $0x60] ss:$8 sps:$4 sm:$0xff]   ;;  %v1317_v36 = vld [vmem:[#allocation4 + $0x94] ss:$8 sps:$4 sm:$0xff]  }
  0x65   :  { %v1314_v34 = vld [vmem:[#allocation4 + $0x84] ss:$8 sps:$4 sm:$0xff]   ;;  %v1316_v35 = vld [vmem:[#allocation4 + $0x80] ss:$8 sps:$4 sm:$0xff]   ;;  %v1319_v37 = vld [vmem:[#allocation4 + $0x90] ss:$8 sps:$4 sm:$0xff]  }
  0x66   :  { %v1320_v38 = vld [vmem:[#allocation4 + $0xa4] ss:$8 sps:$4 sm:$0xff]   ;;  %v1322_v39 = vld [vmem:[#allocation4 + $0xa0] ss:$8 sps:$4 sm:$0xff]   ;;  %v1323_v40 = vld [vmem:[#allocation4 + $0xb4] ss:$8 sps:$4 sm:$0xff]  }
  0x67   :  { %230 = vmatpush1.bf16.msra.mxu0 %v1276_v8  ;;  %481 = vmatpush1.bf16.msra.mxu1 %v1298_v18  ;;  %v1325_v41 = vld [vmem:[#allocation4 + $0xb0] ss:$8 sps:$4 sm:$0xff]   ;;  %v1326_v42 = vld [vmem:[#allocation4 + $0xc4] ss:$8 sps:$4 sm:$0xff]   ;;  %v1328_v43 = vld [vmem:[#allocation4 + $0xc0] ss:$8 sps:$4 sm:$0xff]  }
  0x68   :  { %231 = vmatprep.subr.bf16.mxu0 %v1277_v9  ;;  %482 = vmatprep.subr.bf16.mxu1 %v1299_v20  ;;  %v1329_v44 = vld [vmem:[#allocation4 + $0xd4] ss:$8 sps:$4 sm:$0xff]   ;;  %v1331_v45 = vld [vmem:[#allocation4 + $0xd0] ss:$8 sps:$4 sm:$0xff]   ;;  %v1332_v46 = vld [vmem:[#allocation4 + $0xe4] ss:$8 sps:$4 sm:$0xff]  }
  0x69   :  { %v1334_v47 = vld [vmem:[#allocation4 + $0xe0] ss:$8 sps:$4 sm:$0xff]   ;;  %v1335_v48 = vld [vmem:[#allocation4 + $0xf4] ss:$8 sps:$4 sm:$0xff]   ;;  %v1337_v49 = vld [vmem:[#allocation4 + $0xf0] ss:$8 sps:$4 sm:$0xff]  }
  0x6a   :  { %v1338_v50 = vld [vmem:[#allocation6] ss:$8 sps:$4 sm:$0xff]   ;;  %v1340_v51 = vld [vmem:[#allocation6 + $0x4] ss:$8 sps:$4 sm:$0xff]   ;;  %v1343_v52 = vld [vmem:[#allocation6 + $0x14] ss:$8 sps:$4 sm:$0xff]  }
  0x6b   :  { %232 = vmatpush1.bf16.msra.mxu0 %v1279_v13  ;;  %483 = vmatpush1.bf16.msra.mxu1 %v1301_v22  ;;  %v1341_v53 = vld [vmem:[#allocation6 + $0x10] ss:$8 sps:$4 sm:$0xff]   ;;  %v1346_v54 = vld [vmem:[#allocation6 + $0x24] ss:$8 sps:$4 sm:$0xff]   ;;  %v1344_v55 = vld [vmem:[#allocation6 + $0x20] ss:$8 sps:$4 sm:$0xff]  }
  0x6c   :  { %233 = vmatprep.subr.bf16.mxu0 %v1280_v15  ;;  %484 = vmatprep.subr.bf16.mxu1 %v1302_v24  ;;  %v1349_v56 = vld [vmem:[#allocation6 + $0x34] ss:$8 sps:$4 sm:$0xff]   ;;  %v1347_v57 = vld [vmem:[#allocation6 + $0x30] ss:$8 sps:$4 sm:$0xff]   ;;  %v1352_v58 = vld [vmem:[#allocation6 + $0x44] ss:$8 sps:$4 sm:$0xff]  }
  0x6d   :  { %v1350_v59 = vld [vmem:[#allocation6 + $0x40] ss:$8 sps:$4 sm:$0xff]   ;;  %v1355_v60 = vld [vmem:[#allocation6 + $0x54] ss:$8 sps:$4 sm:$0xff]   ;;  %v1353_v61 = vld [vmem:[#allocation6 + $0x50] ss:$8 sps:$4 sm:$0xff]  }
  0x6e   :  { %v1358_v62 = vld [vmem:[#allocation6 + $0x64] ss:$8 sps:$4 sm:$0xff]   ;;  %v1356_v63 = vld [vmem:[#allocation6 + $0x60] ss:$8 sps:$4 sm:$0xff]   ;;  %v1361_v0 = vld [vmem:[#allocation6 + $0x74] ss:$8 sps:$4 sm:$0xff]  }
  0x6f   :  { %234 = vmatpush1.bf16.msra.mxu0 %v1282_v17  ;;  %485 = vmatpush1.bf16.msra.mxu1 %v1304_v26  ;;  %v1359_v1 = vld [vmem:[#allocation6 + $0x70] ss:$8 sps:$4 sm:$0xff]   ;;  %v1364_v2 = vld [vmem:[#allocation6 + $0x84] ss:$8 sps:$4 sm:$0xff]   ;;  %v1362_v3 = vld [vmem:[#allocation6 + $0x80] ss:$8 sps:$4 sm:$0xff]  }
  0x70   :  { %235 = vmatprep.subr.bf16.mxu0 %v1283_v19  ;;  %486 = vmatprep.subr.bf16.mxu1 %v1305_v28  ;;  %v1367_v4 = vld [vmem:[#allocation6 + $0x94] ss:$8 sps:$4 sm:$0xff]   ;;  %v1365_v5 = vld [vmem:[#allocation6 + $0x90] ss:$8 sps:$4 sm:$0xff]   ;;  %v1370_v6 = vld [vmem:[#allocation6 + $0xa4] ss:$8 sps:$4 sm:$0xff]  }
  0x71   :  { %v1368_v7 = vld [vmem:[#allocation6 + $0xa0] ss:$8 sps:$4 sm:$0xff]   ;;  %v1373_v8 = vld [vmem:[#allocation6 + $0xb4] ss:$8 sps:$4 sm:$0xff]   ;;  %v1371_v9 = vld [vmem:[#allocation6 + $0xb0] ss:$8 sps:$4 sm:$0xff]  }
  0x72   :  { %v1376_v10 = vld [vmem:[#allocation6 + $0xc4] ss:$8 sps:$4 sm:$0xff]   ;;  %v1374_v11 = vld [vmem:[#allocation6 + $0xc0] ss:$8 sps:$4 sm:$0xff]   ;;  %v1379_v12 = vld [vmem:[#allocation6 + $0xd4] ss:$8 sps:$4 sm:$0xff]  }
  0x73   :  { %236 = vmatpush1.bf16.msra.mxu0 %v1285_v21  ;;  %487 = vmatpush1.bf16.msra.mxu1 %v1307_v29  ;;  %v1377_v13 = vld [vmem:[#allocation6 + $0xd0] ss:$8 sps:$4 sm:$0xff]   ;;  %v128_v15 = vshrl.u32 %v127_v14, 7  ;;  %v125_v17 = vld [vmem:[%s1720_s2] sm:$0x3] }
  0x74   :  { %237 = vmatprep.subr.bf16.mxu0 %v1286_v23  ;;  %488 = vmatprep.subr.bf16.mxu1 %v1308_v30  ;;  %v557_v14 = vld [vmem:[%s1724_s6] sm:$0x3] }
  0x75   :  { %v1690_v16 = vsub.s32 0, %v128_v15  ;;  %v1695_v18 = vsub.s32 1, %v128_v15 }
  0x77   :  { %238 = vmatpush1.bf16.msra.mxu0 %v1288_v25  ;;  %489 = vmatpush1.bf16.msra.mxu1 %v1310_v31  ;;  %v130_v19 = vrot.slane %v125_v17, %v1690_v16  ;;  %v134_v20 = vrot.slane %v125_v17, %v1695_v18  ;;  %v562_v15 = vrot.slane %v557_v14, %v1690_v16 }
  0x78   :  { %490 = vmatprep.subr.bf16.mxu1 %v1311_v32  ;;  %729 = vmatprep.subr.bf16.mxu0 %v1340_v51  ;;  %v566_v17 = vrot.slane %v557_v14, %v1695_v18 }
  0x7a   :  { %256 = vmatmul.mubr.bf16.vlgmr.msra.gmra.mrb[0].mxu0 %v1289_v27 }
  0x7b   :  { %491 = vmatpush1.bf16.msra.mxu1 %v1313_v33  ;;  %730 = vmatpush1.bf16.msra.mxu0 %v1338_v50  ;;  %v304_v50 = vld [vmem:[%s1722_s4] sm:$0x3] }
  0x7c   :  { %492 = vmatprep.subr.bf16.mxu1 %v1314_v34  ;;  %731 = vmatprep.subr.bf16.mxu0 %v1343_v52  ;;  %v309_v51 = vrot.slane %v304_v50, %v1690_v16  ;;  %v313_v52 = vrot.slane %v304_v50, %v1695_v18  ;;  %v1408_v16 = vld [vmem:[#allocation9 + $0x30] sm:$0xff]   ;;  %v1409_v18 = vld [vmem:[#allocation9 + $0x38] sm:$0xff]  }
  0x7f   :  { %493 = vmatpush1.bf16.msra.mxu1 %v1316_v35  ;;  %732 = vmatpush1.bf16.msra.mxu0 %v1341_v53  ;;  %v1382_v35 = vld [vmem:[#allocation6 + $0xe4] ss:$8 sps:$4 sm:$0xff]  }
  0x80   :  { %494 = vmatprep.subr.bf16.mxu1 %v1317_v36  ;;  %733 = vmatprep.subr.bf16.mxu0 %v1346_v54  ;;  %v1380_v36 = vld [vmem:[#allocation6 + $0xe0] ss:$8 sps:$4 sm:$0xff]  }
  0x83   :  { %495 = vmatpush1.bf16.msra.mxu1 %v1319_v37  ;;  %734 = vmatpush1.bf16.msra.mxu0 %v1344_v55  ;;  %v1385_v37 = vld [vmem:[#allocation6 + $0xf4] ss:$8 sps:$4 sm:$0xff]  }
  0x84   :  { %496 = vmatprep.subr.bf16.mxu1 %v1320_v38  ;;  %735 = vmatprep.subr.bf16.mxu0 %v1349_v56  ;;  %v1383_v38 = vld [vmem:[#allocation6 + $0xf0] ss:$8 sps:$4 sm:$0xff]  }
  0x87   :  { %497 = vmatpush1.bf16.msra.mxu1 %v1322_v39  ;;  %736 = vmatpush1.bf16.msra.mxu0 %v1347_v57  ;;  %v1386_v39 = vld [vmem:[#allocation7 + $0x40] sm:$0xff]  }
  0x88   :  { %498 = vmatprep.subr.bf16.mxu1 %v1323_v40  ;;  %737 = vmatprep.subr.bf16.mxu0 %v1352_v58  ;;  %v1387_v40 = vld [vmem:[#allocation7] sm:$0xff]  }
  0x8b   :  { %499 = vmatpush1.bf16.msra.mxu1 %v1325_v41  ;;  %738 = vmatpush1.bf16.msra.mxu0 %v1350_v59  ;;  %v1388_v41 = vld [vmem:[#allocation7 + $0x48] sm:$0xff]  }
  0x8c   :  { %500 = vmatprep.subr.bf16.mxu1 %v1326_v42  ;;  %739 = vmatprep.subr.bf16.mxu0 %v1355_v60  ;;  %v1389_v42 = vld [vmem:[#allocation7 + $0x8] sm:$0xff]  }
  0x8f   :  { %501 = vmatpush1.bf16.msra.mxu1 %v1328_v43  ;;  %740 = vmatpush1.bf16.msra.mxu0 %v1353_v61  ;;  %v1390_v43 = vld [vmem:[#allocation7 + $0x50] sm:$0xff]  }
  0x90   :  { %502 = vmatprep.subr.bf16.mxu1 %v1329_v44  ;;  %741 = vmatprep.subr.bf16.mxu0 %v1358_v62  ;;  %v1391_v44 = vld [vmem:[#allocation7 + $0x10] sm:$0xff]  }
  0x93   :  { %503 = vmatpush1.bf16.msra.mxu1 %v1331_v45  ;;  %742 = vmatpush1.bf16.msra.mxu0 %v1356_v63  ;;  %v1392_v45 = vld [vmem:[#allocation7 + $0x58] sm:$0xff]  }
  0x94   :  { %504 = vmatprep.subr.bf16.mxu1 %v1332_v46  ;;  %743 = vmatprep.subr.bf16.mxu0 %v1361_v0  ;;  %v1393_v46 = vld [vmem:[#allocation7 + $0x18] sm:$0xff]  }
  0x97   :  { %505 = vmatpush1.bf16.msra.mxu1 %v1334_v47  ;;  %744 = vmatpush1.bf16.msra.mxu0 %v1359_v1  ;;  %v1394_v47 = vld [vmem:[#allocation7 + $0x60] sm:$0xff]  }
  0x98   :  { %506 = vmatprep.subr.bf16.mxu1 %v1335_v48  ;;  %745 = vmatprep.subr.bf16.mxu0 %v1364_v2  ;;  %v1395_v48 = vld [vmem:[#allocation7 + $0x20] sm:$0xff]  }
  0x9b   :  { %507 = vmatpush1.bf16.msra.mxu1 %v1337_v49  ;;  %746 = vmatpush1.bf16.msra.mxu0 %v1362_v3  ;;  %v1396_v49 = vld [vmem:[#allocation7 + $0x68] sm:$0xff]  }
  0x9c   :  { %747 = vmatprep.subr.bf16.mxu0 %v1367_v4  ;;  %1202 = vmatprep.subr.bf16.mxu1 %v1386_v39  ;;  %v1397_v3 = vld [vmem:[#allocation7 + $0x28] sm:$0xff]   ;;  %v1398_v4 = vld [vmem:[#allocation7 + $0x70] sm:$0xff]  }
  0x9f   :  { %748 = vmatpush1.bf16.msra.mxu0 %v1365_v5  ;;  %v1399_v5 = vld [vmem:[#allocation7 + $0x30] sm:$0xff]  }
  0xa0   :  { %749 = vmatprep.subr.bf16.mxu0 %v1370_v6  ;;  %v1400_v6 = vld [vmem:[#allocation7 + $0x78] sm:$0xff]  }
  0xa3   :  { %750 = vmatpush1.bf16.msra.mxu0 %v1368_v7  ;;  %v1401_v7 = vld [vmem:[#allocation7 + $0x38] sm:$0xff]  }
  0xa4   :  { %751 = vmatprep.subr.bf16.mxu0 %v1373_v8  ;;  %v1402_v8 = vld [vmem:[#allocation9] sm:$0xff]  }
  0xa7   :  { %752 = vmatpush1.bf16.msra.mxu0 %v1371_v9  ;;  %v1536_v9 = vmov 0.0  }
  0xa8   :  { %753 = vmatprep.subr.bf16.mxu0 %v1376_v10  ;;  %v1403_v10 = vld [vmem:[#allocation9 + $0x8] sm:$0xff]  }
  0xab   :  { %754 = vmatpush1.bf16.msra.mxu0 %v1374_v11  ;;  %v1404_v11 = vld [vmem:[#allocation9 + $0x10] sm:$0xff]  }
  0xac   :  { %755 = vmatprep.subr.bf16.mxu0 %v1379_v12  ;;  %v1405_v12 = vld [vmem:[#allocation9 + $0x18] sm:$0xff]  }
  0xaf   :  { %756 = vmatpush1.bf16.msra.mxu0 %v1377_v13  ;;  %v1406_v13 = vld [vmem:[#allocation9 + $0x20] sm:$0xff]  }
  0xb0   :  { %757 = vmatprep.subr.bf16.mxu0 %v1382_v35  ;;  %v1167_v35 = vld [vmem:[%s1726_s8] ss:$0 sm:$0xff] }
  0xb3   :  { %758 = vmatpush1.bf16.msra.mxu0 %v1380_v36 }
  0xb4   :  { %759 = vmatprep.subr.bf16.mxu0 %v1385_v37 }
  0xb7   :  { %760 = vmatpush1.bf16.msra.mxu0 %v1383_v38 }
  0xb8   :  { %1233 = vmatprep.subr.bf16.mxu0 %v1536_v9 }
 0x14d   :  { %v257_v21 = vpop.f32.mrb[0].mxu0 }
 0x14e   :  { %v258_v22 = vadd.f32 %v257_v21, %v130_v19  ;;  %v259_v23 = vpop.f32.mrb[1].mxu0 }
 0x14f   :  { %v260_v24 = vadd.f32 %v259_v23, %v134_v20  ;;  %v261_v25 = vpop.f32.mrb[2].mxu0 }
 0x150   :  { %v262_v26 = vadd.f32 %v261_v25, %v130_v19  ;;  %v263_v27 = vpop.f32.mrb[3].mxu0  ;;  %v266_v29 = vmax.f32 %v258_v22, 0.0 }
 0x151   :  { %v264_v28 = vadd.f32 %v263_v27, %v134_v20  ;;  %v267_v31 = vmax.f32 %v260_v24, 0.0 }
 0x152   :  { %v268_v30 = vmax.f32 %v262_v26, 0.0 }
 0x153   :  { %v269_v32 = vmax.f32 %v264_v28, 0.0 }
 0x154   :  { %v270_v33 = vpack.c.bf16 %v268_v30, %v266_v29 }
 0x155   :  { %v271_v34 = vpack.c.bf16 %v269_v32, %v267_v31 }
 0x157   :  { %508 = vmatprep.mubr.bf16.mxu1 %v271_v34 }
 0x158   :  { %509 = vmatmul.mubr.bf16.vlgmr.msra.gmra.mrb[0].mxu1 %v270_v33  ;;  %v1407_v33 = vld [vmem:[#allocation9 + $0x28] sm:$0xff]  }
 0x159   :  { %1203 = vmatpush3.bf16.msra.mxu1 %v1387_v40 }
 0x15a   :  { %1204 = vmatprep.subr.bf16.mxu1 %v1388_v41 }
 0x15d   :  { %1205 = vmatpush3.bf16.msra.mxu1 %v1389_v42 }
 0x15e   :  { %1206 = vmatprep.subr.bf16.mxu1 %v1390_v43 }
 0x161   :  { %1207 = vmatpush3.bf16.msra.mxu1 %v1391_v44 }
 0x162   :  { %1208 = vmatprep.subr.bf16.mxu1 %v1392_v45 }
 0x165   :  { %1209 = vmatpush3.bf16.msra.mxu1 %v1393_v46  ;;  %v1184_v46 = vld [vmem:[%s1728_s10] ss:$0 sm:$0xff] }
 0x166   :  { %1210 = vmatprep.subr.bf16.mxu1 %v1394_v47 }
 0x169   :  { %1211 = vmatpush3.bf16.msra.mxu1 %v1395_v48 }
 0x16a   :  { %1212 = vmatprep.subr.bf16.mxu1 %v1396_v49 }
 0x16d   :  { %1213 = vmatpush3.bf16.msra.mxu1 %v1397_v3 }
 0x16e   :  { %1214 = vmatprep.subr.bf16.mxu1 %v1398_v4 }
 0x171   :  { %1215 = vmatpush3.bf16.msra.mxu1 %v1399_v5 }
 0x172   :  { %1216 = vmatprep.subr.bf16.mxu1 %v1400_v6 }
 0x175   :  { %1217 = vmatpush3.bf16.msra.mxu1 %v1401_v7 }
 0x22b   :  { %v510_v53 = vpop.f32.mrb[0].mxu1 }
 0x22c   :  { %v511_v54 = vadd.f32 %v510_v53, %v309_v51  ;;  %v512_v55 = vpop.f32.mrb[1].mxu1 }
 0x22d   :  { %v513_v56 = vadd.f32 %v512_v55, %v313_v52  ;;  %v514_v57 = vpop.f32.mrb[2].mxu1 }
 0x22e   :  { %v515_v58 = vadd.f32 %v514_v57, %v309_v51  ;;  %v516_v59 = vpop.f32.mrb[3].mxu1  ;;  %v519_v61 = vmax.f32 %v511_v54, 0.0 }
 0x22f   :  { %v517_v60 = vadd.f32 %v516_v59, %v313_v52  ;;  %v520_v63 = vmax.f32 %v513_v56, 0.0 }
 0x230   :  { %v521_v62 = vmax.f32 %v515_v58, 0.0 }
 0x231   :  { %v522_v0 = vmax.f32 %v517_v60, 0.0 }
 0x232   :  { %v523_v1 = vpack.c.bf16 %v521_v62, %v519_v61 }
 0x233   :  { %v524_v2 = vpack.c.bf16 %v522_v0, %v520_v63 }
 0x235   :  { %761 = vmatprep.mubr.bf16.mxu0 %v524_v2 }
 0x236   :  { %762 = vmatmul.mubr.bf16.vlgmr.msra.gmra.mrb[4].mxu0 %v523_v1 }
 0x237   :  { %1234 = vmatpush3.bf16.msra.mxu0 %v1402_v8  ;;  %1249 = vmatprep.mubr.msk.bf16.mxu0 %vm1537_vm0, %v1536_v9 }
 0x238   :  { %1235 = vmatprep.subr.bf16.mxu0 %v1536_v9 }
 0x23b   :  { %1236 = vmatpush3.bf16.msra.mxu0 %v1403_v10 }
 0x23c   :  { %1237 = vmatprep.subr.bf16.mxu0 %v1536_v9 }
 0x23f   :  { %1238 = vmatpush3.bf16.msra.mxu0 %v1404_v11 }
 0x240   :  { %1239 = vmatprep.subr.bf16.mxu0 %v1536_v9 }
 0x243   :  { %1240 = vmatpush3.bf16.msra.mxu0 %v1405_v12 }
 0x244   :  { %1241 = vmatprep.subr.bf16.mxu0 %v1536_v9 }
 0x247   :  { %1242 = vmatpush3.bf16.msra.mxu0 %v1406_v13 }
 0x248   :  { %1243 = vmatprep.subr.bf16.mxu0 %v1536_v9 }
 0x24b   :  { %1244 = vmatpush3.bf16.msra.mxu0 %v1407_v33 }
 0x24c   :  { %1245 = vmatprep.subr.bf16.mxu0 %v1536_v9 }
 0x24f   :  { %1246 = vmatpush3.bf16.msra.mxu0 %v1408_v16 }
 0x250   :  { %1247 = vmatprep.subr.bf16.mxu0 %v1536_v9 }
 0x253   :  { %1248 = vmatpush3.bf16.msra.mxu0 %v1409_v18 }
 0x309   :  { %v763_v19 = vpop.f32.mrb[4].mxu0 }
 0x30a   :  { %v764_v20 = vadd.f32 %v763_v19, %v562_v15  ;;  %v765_v21 = vpop.f32.mrb[5].mxu0 }
 0x30b   :  { %v766_v22 = vadd.f32 %v765_v21, %v566_v17  ;;  %v767_v23 = vpop.f32.mrb[6].mxu0 }
 0x30c   :  { %v768_v24 = vadd.f32 %v767_v23, %v562_v15  ;;  %v769_v25 = vpop.f32.mrb[7].mxu0  ;;  %v772_v27 = vmax.f32 %v764_v20, 0.0 }
 0x30d   :  { %v770_v26 = vadd.f32 %v769_v25, %v566_v17  ;;  %v773_v29 = vmax.f32 %v766_v22, 0.0 }
 0x30e   :  { %v774_v28 = vmax.f32 %v768_v24, 0.0 }
 0x30f   :  { %v775_v30 = vmax.f32 %v770_v26, 0.0 }
 0x310   :  { %v776_v31 = vpack.c.bf16 %v774_v28, %v772_v27 }
 0x311   :  { %v777_v32 = vpack.c.bf16 %v775_v30, %v773_v29 }
 0x313   :  { %945 = vmatprep.mubr.bf16.mxu1 %v777_v32 }
 0x314   :  { %946 = vmatmul.mubr.bf16.vlgmr.msra.gmra.mrb[4].mxu1 %v776_v31 }
 0x3e7   :  { %v1218_v34 = vpop.f32.mrb[4].mxu1 }
 0x3e8   :  { %v1219_v36 = vpop.f32.mrb[5].mxu1 }
 0x3e9   :  { %v1220_v37 = vadd.f32 %v1219_v36, %v1218_v34  ;;  %v1221_v38 = vpop.f32.mrb[6].mxu1 }
 0x3ea   :  { %v1222_v39 = vpop.f32.mrb[7].mxu1 }
 0x3eb   :  { %v948_v40 = vadd.f32 %v1220_v37, %v1167_v35  ;;  %v1223_v41 = vadd.f32 %v1222_v39, %v1221_v38 }
 0x3ed   :  { %v951_v42 = vadd.f32 %v1223_v41, %v1167_v35  ;;  %v954_v43 = vmax.f32 %v948_v40, 0.0 }
 0x3ef   :  { %v955_v44 = vmax.f32 %v951_v42, 0.0 }
 0x3f1   :  { %v956_v45 = vpack.c.bf16 %v955_v44, %v954_v43 }
 0x3f3   :  { %1250 = vmatmul.mubr.bf16.vlgmr.msra.gmra.mrb[8].mxu0 %v956_v45 }
 0x4c6   :  { %v1062_v47 = vpop.f32.mrb[8].mxu0 }
 0x4c7   :  { %v1251_v48 = vpop.f32.mrb[9].mxu0  ;;  %v1063_v50 = vadd.f32 %v1184_v46, %v1062_v47 }
 0x4c8   :  { %v1065_v49 = vpop.f32.mrb[10].mxu0 }
 0x4c9   :  { %v1066_v51 = vadd.f32 %v1184_v46, %v1065_v49  ;;  %v1252_v52 = vpop.f32.mrb[11].mxu0 }
 0x4cb   :  { %v1200_v53 = vpack.c.bf16 %v1066_v51, %v1063_v50 }
 0x4cd   :  { %1201 = vst [vmem:[%s1729_s11] sm:$0xff] %v1200_v53  }
 0x4ce   :  { %1083 = vsyncpa [#allocation3], 1 }
 0x4cf   :  { %1084 = vsyncpa [#allocation5], 1 }
 0x4d0   :  { %1085 = vsyncpa [#allocation8], 1 }

</bundles_post_ra>
